<compile_context>
chip_gen: v5e
topology: v5e:2x2
jax: 0.10.0
libtpu: 0.0.40
codegen_flags: <defaults>
</compile_context>

<pallas_src>
import functools
import math

import jax
import jax.numpy as jnp
from jax.experimental import pallas as pl
from jax.experimental.pallas import tpu as pltpu


def _lognormal_sample_kernel(mu_ref, sigma_ref, eps_ref, out_ref):
    """One (tile_rows, L) block: out = exp(mu + eps * sigma)."""
    z = mu_ref[...] + eps_ref[...] * sigma_ref[...]   # (1, L) broadcasts over rows
    out_ref[...] = jnp.exp(z).astype(out_ref.dtype)


def _packing(n_samples: int, n_params: int):
    """Pack `pack` samples per physical row so the lane dim is a multiple of 128."""
    f = 128 // math.gcd(n_params, 128)
    pack = f if (f > 1 and n_samples % f == 0) else 1
    return pack, pack * n_params, n_samples // pack    # (pack, L, n_rows)


def _pick_tile_rows(n_rows: int, row_bytes: int, target_bytes: int = 4 << 20) -> int:
    """Largest multiple-of-8 row count whose output tile is ~target_bytes."""
    rows = max((target_bytes // max(row_bytes, 1)) // 8 * 8, 8)
    if rows >= n_rows:
        if n_rows >= 16:
            # Guarantee >= 2 grid steps so the "parallel" axis can use both
            # v7x TensorCores; harmless on v5e/v6e.
            rows = max(8, (n_rows // 2) // 8 * 8)
        else:
            rows = n_rows               # full-extent block is always legal
    return min(rows, n_rows)


@functools.partial(jax.jit, static_argnames=("n_samples", "tile_rows", "out_dtype"))
def _sample_lognormal(mu, log_sigma, key, *, n_samples, tile_rows=None,
                      out_dtype=jnp.float32):
    n_params = mu.shape[-1]
    pack, L, n_rows = _packing(n_samples, n_params)

    mu_row = jnp.tile(mu.reshape(1, n_params).astype(jnp.float32), (1, pack))
    # Hoisted: sigma computed once in the wrapper, not per grid step.
    sigma_row = jnp.tile(
        jnp.exp(log_sigma).reshape(1, n_params).astype(jnp.float32), (1, pack))
    eps = jax.random.normal(key, (n_rows, L), dtype=jnp.float32)

    if tile_rows is None:
        tile_rows = _pick_tile_rows(n_rows, L * 4)
    else:
        tile_rows = min(int(tile_rows), n_rows)
    grid = (pl.cdiv(n_rows, tile_rows),)

    grid_spec = pltpu.PrefetchScalarGridSpec(
        num_scalar_prefetch=0,
        grid=grid,
        in_specs=[
            pl.BlockSpec((1, L), lambda i: (0, 0)),            # mu     (resident)
            pl.BlockSpec((1, L), lambda i: (0, 0)),            # sigma  (resident)
            pl.BlockSpec((tile_rows, L), lambda i: (i, 0)),    # eps    (pipelined)
        ],
        out_specs=pl.BlockSpec((tile_rows, L), lambda i: (i, 0)),
    )
    out = pl.pallas_call(
        _lognormal_sample_kernel,
        out_shape=jax.ShapeDtypeStruct((n_rows, L), out_dtype),
        grid_spec=grid_spec,
        compiler_params=pltpu.CompilerParams(
            dimension_semantics=("parallel",),        # v7x: shard tiles over 2 TCs
            vmem_limit_bytes=32 * 1024 * 1024,        # v7x-safe (64 MiB physical)
        ),
    )(mu_row, sigma_row, eps)
    # Row-major unpack of the lane-packed layout back to (n_samples, n_params).
    return out.reshape(n_samples, n_params)


class LogNormalPriorPallas:
    """JAX/Pallas port of arlatentsde LogNormalPrior (forward = reparam samples)."""

    def __init__(self, mu_prior, log_sigma_prior, mu_init=None, log_sigma_init=None):
        n_params = mu_prior.shape[0]
        if mu_init is None:
            mu_init = jnp.zeros((n_params,), jnp.float32)
        if log_sigma_init is None:
            log_sigma_init = jnp.log(jnp.ones((n_params,), jnp.float32))
        assert mu_prior.shape == log_sigma_prior.shape == mu_init.shape == log_sigma_init.shape
        self.n_params = n_params
        self.mu_prior = jnp.asarray(mu_prior, jnp.float32)
        self.log_sigma_prior = jnp.asarray(log_sigma_prior, jnp.float32)
        self.mu = jnp.asarray(mu_init, jnp.float32)
        self.log_sigma = jnp.asarray(log_sigma_init, jnp.float32)

    def forward(self, n_samples: int, seed=0, *, tile_rows=None,
                out_dtype=jnp.float32) -> jnp.ndarray:
        key = jax.random.PRNGKey(seed)
        return _sample_lognormal(self.mu, self.log_sigma, key,
                                 n_samples=n_samples, tile_rows=tile_rows,
                                 out_dtype=out_dtype)

    __call__ = forward

    def get_reparam_weights(self, n_samples: int, seed=0) -> jnp.ndarray:
        return self.forward(n_samples, seed)

    def kl_divergence(self) -> jnp.ndarray:
        # Plain JAX on purpose: a handful of (P,) reductions; a dedicated
        # pallas_call is pure launch/dispatch overhead.
        sigma_p = jnp.exp(self.log_sigma_prior)
        d = jnp.float32(self.n_params)
        return (
            self.log_sigma_prior.sum()
            - self.log_sigma.sum()
            - d / 2.0
            + 0.5 * jnp.sum(jnp.square(jnp.exp(self.log_sigma)) / jnp.square(sigma_p))
            + 0.5 * jnp.sum(jnp.square((self.mu - self.mu_prior) / sigma_p))
        )


if __name__ == "__main__":
    n_params = 32       # NOT a multiple of 128 -> exercises the lane-packing path
    n_samples = 64      # pack = 4, L = 128, n_rows = 16 -> grid of 2 tiles of 8 rows

    key = jax.random.PRNGKey(0)
    k_mu, k_ls = jax.random.split(key)
    mu_prior = 0.1 * jax.random.normal(k_mu, (n_params,), dtype=jnp.float32)
    log_sigma_prior = 0.05 * jax.random.normal(k_ls, (n_params,), dtype=jnp.float32)

    # Posterior uses module defaults: mu = zeros, log_sigma = log(ones) = zeros.
    prior = LogNormalPriorPallas(mu_prior, log_sigma_prior)

    samples = jax.block_until_ready(prior.forward(n_samples, seed=1234))
    assert samples.shape == (n_samples, n_params)
    assert samples.dtype == jnp.float32
    assert bool(jnp.all(jnp.isfinite(samples)))
    assert bool(jnp.all(samples > 0.0))

    # Exact reference: same eps draw, pure JAX (exp(mu + eps * sigma)).
    pack, L, n_rows = _packing(n_samples, n_params)
    eps_ref = jax.random.normal(jax.random.PRNGKey(1234), (n_rows, L), dtype=jnp.float32)
    mu_t = jnp.tile(prior.mu.reshape(1, -1), (1, pack))
    sg_t = jnp.tile(jnp.exp(prior.log_sigma).reshape(1, -1), (1, pack))
    ref = jnp.exp(mu_t + eps_ref * sg_t).reshape(n_samples, n_params)
    assert jnp.allclose(samples, ref, rtol=1e-6, atol=1e-6)

    # Deterministic per seed; a different seed gives new draws.
    samples2 = jax.block_until_ready(prior.forward(n_samples, seed=1234))
    assert bool(jnp.all(samples == samples2))
    samples3 = jax.block_until_ready(prior.forward(n_samples, seed=4321))
    assert not bool(jnp.all(samples == samples3))

    # bf16 output path (halves HBM write traffic; compute stays f32).
    samples_bf16 = jax.block_until_ready(
        prior.forward(n_samples, seed=1234, out_dtype=jnp.bfloat16))
    assert samples_bf16.dtype == jnp.bfloat16
    assert samples_bf16.shape == (n_samples, n_params)

    # Statistical sanity: with mu = 0 and log_sigma = 0, log(samples) = eps ~ N(0,1).
    z = jnp.log(samples)
    assert abs(float(z.mean())) < 0.2
    assert 0.8 < float(z.std()) < 1.2

    # KL divergence (plain JAX) vs. the reference formula.
    kl = jax.block_until_ready(prior.kl_divergence())
    sigma_p = jnp.exp(prior.log_sigma_prior)
    kl_ref = (
        prior.log_sigma_prior.sum()
        - prior.log_sigma.sum()
        - n_params / 2.0
        + 0.5 * (jnp.exp(prior.log_sigma) ** 2 / sigma_p ** 2).sum()
        + 0.5 * (((prior.mu - prior.mu_prior) / sigma_p) ** 2).sum()
    )
    assert jnp.allclose(kl, kl_ref, rtol=1e-5, atol=1e-5)

    print("KERNEL_OK")
</pallas_src>

<mosaic_0001>
module attributes {stable_mosaic.version = 11 : i64} {
  func.func @_lognormal_sample_kernel(%arg0: i32, %arg1: memref<1x128xf32, #tpu.memory_space<vmem>>, %arg2: memref<1x128xf32, #tpu.memory_space<vmem>>, %arg3: memref<8x128xf32, #tpu.memory_space<vmem>>, %arg4: memref<8x128xf32, #tpu.memory_space<vmem>>) attributes {dimension_semantics = [#tpu.dimension_semantics<parallel>], iteration_bounds = array<i64: 2>, scalar_prefetch = 0 : i64, scratch_operands = 0 : i64, tpu.core_type = #tpu.core_type<tc>, window_params = [{pipeline_mode = #tpu.pipeline_mode<synchronous>, transform_indices = @transform_0, window_bounds = array<i64: 1, 128>}, {pipeline_mode = #tpu.pipeline_mode<synchronous>, transform_indices = @transform_1, window_bounds = array<i64: 1, 128>}, {transform_indices = @transform_2, window_bounds = array<i64: 8, 128>}, {transform_indices = @transform_3, window_bounds = array<i64: 8, 128>}]} {
    %c0 = arith.constant 0 : index
    %c0_0 = arith.constant 0 : index
    %0 = vector.load %arg1[%c0, %c0_0] : memref<1x128xf32, #tpu.memory_space<vmem>>, vector<1x128xf32>
    %c0_1 = arith.constant 0 : index
    %c0_2 = arith.constant 0 : index
    %1 = vector.load %arg3[%c0_1, %c0_2] : memref<8x128xf32, #tpu.memory_space<vmem>>, vector<8x128xf32>
    %c0_3 = arith.constant 0 : index
    %c0_4 = arith.constant 0 : index
    %2 = vector.load %arg2[%c0_3, %c0_4] : memref<1x128xf32, #tpu.memory_space<vmem>>, vector<1x128xf32>
    %3 = vector.broadcast %2 : vector<1x128xf32> to vector<8x128xf32>
    %4 = arith.mulf %1, %3 : vector<8x128xf32>
    %5 = vector.broadcast %0 : vector<1x128xf32> to vector<8x128xf32>
    %6 = arith.addf %5, %4 : vector<8x128xf32>
    %7 = math.exp %6 : vector<8x128xf32>
    %c0_5 = arith.constant 0 : index
    %c0_6 = arith.constant 0 : index
    %8 = vector.load %arg4[%c0_5, %c0_6] : memref<8x128xf32, #tpu.memory_space<vmem>>, vector<8x128xf32>
    tpu.vector_store %arg4[%c0_5, %c0_6], %7 {strides = array<i32>} : memref<8x128xf32, #tpu.memory_space<vmem>>, vector<8x128xf32>,
    return
  }
  func.func @transform_0(%arg0: i32) -> (i32, i32) {
    %c0_i32 = arith.constant 0 : i32
    %c0_i32_0 = arith.constant 0 : i32
    %c0_i32_1 = arith.constant 0 : i32
    return %c0_i32, %c0_i32_0 : i32, i32
  }
  func.func @transform_1(%arg0: i32) -> (i32, i32) {
    %c0_i32 = arith.constant 0 : i32
    %c0_i32_0 = arith.constant 0 : i32
    %c0_i32_1 = arith.constant 0 : i32
    return %c0_i32, %c0_i32_0 : i32, i32
  }
  func.func @transform_2(%arg0: i32) -> (i32, i32) {
    %c0_i32 = arith.constant 0 : i32
    %c0_i32_0 = arith.constant 0 : i32
    return %arg0, %c0_i32 : i32, i32
  }
  func.func @transform_3(%arg0: i32) -> (i32, i32) {
    %c0_i32 = arith.constant 0 : i32
    %c0_i32_0 = arith.constant 0 : i32
    return %arg0, %c0_i32 : i32, i32
  }
}

</mosaic_0001>

<bundles_post_ra>
// kernel: _sample_lognormal.1
= control target key start
LH: loop header
LB: loop body
LE: loop exit
PB: predicated region body
PF: predicated region fallthrough
CT: control target
= control target key end

     0   :  { %s258_s12 = smov 0   ;;  %s294_s0 = inlined_call_operand.vmem [shape: f32[1,128], index: 0, kind: input, shape index: {}]   ;;  %s295_s1 = inlined_call_operand.vmem [shape: f32[1,128], index: 1, kind: input, shape index: {}]   ;;  %s296_s2 = inlined_call_operand.vmem [shape: f32[16,128], index: 2, kind: input, shape index: {}]   ;;  %s297_s3 = inlined_call_operand.vmem [shape: f32[16,128], index: 3, kind: output, shape index: {}]  }
   0x1 LB: > { %s233_s13 = sadd.s32 4294967295, %s260_s12   ;;  %p237_p0 = scmp.ge.s32.totalorder %s260_s12, 1  ;;  %s260_s12 = sphi %s258_s12, %s13_s12  }
   0x2   : > { %p136_p1 = scmp.lt.s32.totalorder %s260_s12, 3 }
   0x4   : > { %p137_p2 = pnand %p237_p0, %p136_p1 }
   0x5   : > { %p158_p3 = scmp.lt.s32.totalorder (!%p137_p2), %s233_s13, 1 }
   0x6   : > { %140 = sbr.rel (%p137_p2) target bundleno = 29 (0x1d), region = 32 }
   0xb   : > { %s299_s13 = smov (!%p158_p3, %s233_s13), 1  ;;  %v250_v0 = vld [vmem:[%s295_s1] ss:$0 sm:$0xff] }
   0xc   : > { %s238_s16 = sshll.u32 %s299_s13, 3  ;;  %v251_v1 = vld [vmem:[%s294_s0] ss:$0 sm:$0xff] }
   0xd   : > { %s161_s19 = scalar_lea.vmem %s296_s2, %s238_s16  ;;  %s165_s24 = scalar_lea.vmem %s297_s3, %s238_s16 }
   0xe   : > { %v167_v2 = vld [vmem:[%s161_s19] sm:$0xff] }
   0xf   : > { %v172_v3 = vmul.f32 %v250_v0, %v167_v2 }
  0x11   : > { %v176_v4 = vadd.f32 %v251_v1, %v172_v3 }
  0x13   : > { %v177_v5 = vmul.f32 1.442695, %v176_v4 }
  0x15   : > { %252 = vpow2.f32 %v177_v5 }
  0x1b   : > { %v253_v6 = vpop.eup %252 }
  0x1c   : > { %179 = vst [vmem:[%s165_s24] sm:$0xff] %v253_v6 }
  0x1d PF: > { %s13_s12 = sadd.s32 1, %s260_s12  }
  0x1e   : > { %p10_p4 = scmp.ge.s32.totalorder %s13_s12, 4  }
  0x20   :  { %12 = sbr.rel (!%p10_p4) target bundleno = 1 (0x1), region = 62 }

</bundles_post_ra>
